<compile_context>
chip_gen: v7x
topology: tpu7x:2x2x1
jax: 0.10.0
libtpu: 0.0.40
codegen_flags: <defaults>
</compile_context>

<pallas_src>
import functools
import math

import jax
import jax.numpy as jnp
from jax.experimental import pallas as pl
from jax.experimental.pallas import tpu as pltpu


# ---------------------------------------------------------------------------
# Stage A: wide projection matmul   T = x1a_flat @ W_flat
# ---------------------------------------------------------------------------
def _proj_kernel(x1_ref, w_ref, t_ref):
    # x1_ref: (RB, D1a)   w_ref: (D1a, CB)   t_ref: (RB, CB)
    t_ref[...] = jnp.dot(x1_ref[...], w_ref[...],
                         preferred_element_type=jnp.float32)


# ---------------------------------------------------------------------------
# Stage B: cross contraction over e + bias add
# ---------------------------------------------------------------------------
def _cross_kernel(x2_ref, t_ref, b_ref, out_ref):
    # x2_ref: (1, n2, D2a)  t_ref: (1, TB, D2a, O)  b_ref: (1, O)  out_ref: (1, TB, n2, O)
    n1b = t_ref.shape[1]
    n2 = x2_ref.shape[1]
    d2a = x2_ref.shape[2]

    x2 = x2_ref[0]                                           # (n2, D2a)
    t3 = t_ref[0]                                            # (TB, D2a, O)
    x2b = jnp.broadcast_to(x2[None, :, :], (n1b, n2, d2a))   # cheap leading-dim bcast

    # batched MXU matmul: out[n, m, o] = sum_e x2[m, e] * t3[n, e, o]
    out = jnp.einsum('nme,neo->nmo', x2b, t3,
                     preferred_element_type=jnp.float32)     # (TB, n2, O)
    out_ref[0] = out + b_ref[...]                            # fused bias add


# ---------------------------------------------------------------------------
# wrapper
# ---------------------------------------------------------------------------
_ROW_BLOCK_TARGET = 512    # rows of the flattened (bs*n1) dim per stage-A step
_COL_BLOCK_TARGET = 2048   # lane columns (D2a*O) per stage-A step
_N1_BLOCK_TARGET = 128     # n1 rows per stage-B step


def _pick_block(total, target, align):
    """Largest divisor of `total` that is <= target and a multiple of `align`;
    falls back to the full extent (always a legal Pallas block)."""
    if total <= target:
        return total
    for cand in range(target, 0, -1):
        if total % cand == 0 and cand % align == 0:
            return cand
    return total


@functools.partial(jax.jit, static_argnames=("bias_1", "bias_2"))
def biaf_cross_forward(input1, input2, weight, bias, *, bias_1=True, bias_2=True):
    bs, n1, d1 = input1.shape
    bs2, n2, d2 = input2.shape
    d1a, d2a, out_dim = weight.shape
    assert bs == bs2
    assert d1a == d1 + int(bias_1) and d2a == d2 + int(bias_2), "weight/bias-flag mismatch"

    x1 = input1
    x2 = input2
    if bias_1:  # append the "ones" feature column (torch: cat([input1, ones], -1))
        x1 = jnp.concatenate([x1, jnp.ones_like(x1[..., :1])], axis=-1)
    if bias_2:
        x2 = jnp.concatenate([x2, jnp.ones_like(x2[..., :1])], axis=-1)

    # ----------------- Stage A: T[(b,n), (e,o)] = x1a @ W -----------------
    rows = bs * n1
    cols = d2a * out_dim
    x1_flat = x1.reshape(rows, d1a)          # contiguous -> free
    w_flat = weight.reshape(d1a, cols)       # contiguous -> free

    rb = _pick_block(rows, _ROW_BLOCK_TARGET, 8)
    cb = _pick_block(cols, _COL_BLOCK_TARGET, 128)

    t_flat = pl.pallas_call(
        _proj_kernel,
        grid=(rows // rb, cols // cb),
        in_specs=[
            pl.BlockSpec((rb, d1a), lambda i, j: (i, 0)),
            pl.BlockSpec((d1a, cb), lambda i, j: (0, j)),
        ],
        out_specs=pl.BlockSpec((rb, cb), lambda i, j: (i, j)),
        out_shape=jax.ShapeDtypeStruct((rows, cols), jnp.float32),
        compiler_params=pltpu.CompilerParams(
            dimension_semantics=("parallel", "parallel")),
    )(x1_flat, w_flat)

    # Free contiguous reshape at the HBM/XLA level: regroup the lane columns as
    # (e, o) so stage B never needs an in-kernel minor-dim relayout.
    t4 = t_flat.reshape(bs, n1, d2a, out_dim)

    # ----------------- Stage B: out = sum_e x2a * T + bias -----------------
    tb = _pick_block(n1, _N1_BLOCK_TARGET, 8)
    bias2d = bias.reshape(1, out_dim)

    out = pl.pallas_call(
        _cross_kernel,
        grid=(bs, n1 // tb),
        in_specs=[
            pl.BlockSpec((1, n2, d2a), lambda b, i: (b, 0, 0)),
            pl.BlockSpec((1, tb, d2a, out_dim), lambda b, i: (b, i, 0, 0)),
            pl.BlockSpec((1, out_dim), lambda b, i: (0, 0)),
        ],
        out_specs=pl.BlockSpec((1, tb, n2, out_dim), lambda b, i: (b, i, 0, 0)),
        out_shape=jax.ShapeDtypeStruct((bs, n1, n2, out_dim), jnp.float32),
        compiler_params=pltpu.CompilerParams(
            dimension_semantics=("parallel", "parallel")),
    )(x2, t4, bias2d)

    return out


# ---------------------------------------------------------------------------
if __name__ == "__main__":
    bs, n1, n2 = 2, 8, 8
    d1, d2, out_dim = 32, 32, 16

    key = jax.random.PRNGKey(0)
    k1, k2, kw, kb = jax.random.split(key, 4)
    input1 = jax.random.normal(k1, (bs, n1, d1), jnp.float32)
    input2 = jax.random.normal(k2, (bs, n2, d2), jnp.float32)

    d1a, d2a = d1 + 1, d2 + 1
    # mimic torch.nn.init.xavier_normal_ on weight (d1a, d2a, out_dim):
    # fan_in = d2a*out_dim, fan_out = d1a*out_dim
    std = math.sqrt(2.0 / ((d1a + d2a) * out_dim))
    weight = std * jax.random.normal(kw, (d1a, d2a, out_dim), jnp.float32)
    # torch init zero-fills the bias; use a small nonzero one to exercise the add path
    bias = 0.1 * jax.random.normal(kb, (out_dim,), jnp.float32)

    out = biaf_cross_forward(input1, input2, weight, bias)
    jax.block_until_ready(out)

    # pure-JAX reference of the PyTorch forward (factorize=False path)
    x1a = jnp.concatenate([input1, jnp.ones_like(input1[..., :1])], -1)
    x2a = jnp.concatenate([input2, jnp.ones_like(input2[..., :1])], -1)
    ref = jnp.einsum('bnd,bme,deo->bnmo', x1a, x2a, weight,
                     precision=jax.lax.Precision.HIGHEST) + bias

    assert out.shape == (bs, n1, n2, out_dim)
    max_err = float(jnp.max(jnp.abs(out - ref)))
    assert max_err < 1e-2, f"mismatch vs reference, max abs err = {max_err}"
    print("KERNEL_OK")
</pallas_src>

<mosaic_0001>
module attributes {stable_mosaic.version = 11 : i64} {
  func.func @_proj_kernel(%arg0: i32, %arg1: i32, %arg2: memref<16x33xf32, #tpu.memory_space<vmem>>, %arg3: memref<33x528xf32, #tpu.memory_space<vmem>>, %arg4: memref<16x528xf32, #tpu.memory_space<vmem>>) attributes {dimension_semantics = [#tpu.dimension_semantics<parallel>, #tpu.dimension_semantics<parallel>], iteration_bounds = array<i64: 1, 1>, scalar_prefetch = 0 : i64, scratch_operands = 0 : i64, tpu.core_type = #tpu.core_type<tc>, window_params = [{transform_indices = @transform_0, window_bounds = array<i64: 16, 33>}, {transform_indices = @transform_1, window_bounds = array<i64: 33, 528>}, {transform_indices = @transform_2, window_bounds = array<i64: 16, 528>}]} {
    %c0 = arith.constant 0 : index
    %c0_0 = arith.constant 0 : index
    %0 = vector.load %arg2[%c0, %c0_0] : memref<16x33xf32, #tpu.memory_space<vmem>>, vector<16x33xf32>
    %c0_1 = arith.constant 0 : index
    %c0_2 = arith.constant 0 : index
    %1 = vector.load %arg3[%c0_1, %c0_2] : memref<33x528xf32, #tpu.memory_space<vmem>>, vector<33x528xf32>
    %cst = arith.constant dense<0.000000e+00> : vector<16x528xf32>
    %2 = tpu.matmul %0, %1, %cst {dimension_numbers = #tpu.dot_dimension_numbers<[1], [0], [0], [1], [0, 0, 1, 1], [], []>} : vector<16x33xf32>, vector<33x528xf32>, vector<16x528xf32> -> vector<16x528xf32>
    %c0_3 = arith.constant 0 : index
    %c0_4 = arith.constant 0 : index
    %3 = vector.load %arg4[%c0_3, %c0_4] : memref<16x528xf32, #tpu.memory_space<vmem>>, vector<16x528xf32>
    tpu.vector_store %arg4[%c0_3, %c0_4], %2 {strides = array<i32>} : memref<16x528xf32, #tpu.memory_space<vmem>>, vector<16x528xf32>,
    return
  }
  func.func @transform_0(%arg0: i32, %arg1: i32) -> (i32, i32) {
    %c0_i32 = arith.constant 0 : i32
    %c0_i32_0 = arith.constant 0 : i32
    return %arg0, %c0_i32 : i32, i32
  }
  func.func @transform_1(%arg0: i32, %arg1: i32) -> (i32, i32) {
    %c0_i32 = arith.constant 0 : i32
    %c0_i32_0 = arith.constant 0 : i32
    return %c0_i32, %arg1 : i32, i32
  }
  func.func @transform_2(%arg0: i32, %arg1: i32) -> (i32, i32) {
    %c0_i32 = arith.constant 0 : i32
    return %arg0, %arg1 : i32, i32
  }
}

module attributes {stable_mosaic.version = 11 : i64} {
  func.func @_cross_kernel(%arg0: i32, %arg1: i32, %arg2: memref<1x8x33xf32, #tpu.memory_space<vmem>>, %arg3: memref<1x8x33x16xf32, #tpu.memory_space<vmem>>, %arg4: memref<1x16xf32, #tpu.memory_space<vmem>>, %arg5: memref<1x8x8x16xf32, #tpu.memory_space<vmem>>) attributes {dimension_semantics = [#tpu.dimension_semantics<parallel>, #tpu.dimension_semantics<parallel>], iteration_bounds = array<i64: 2, 1>, scalar_prefetch = 0 : i64, scratch_operands = 0 : i64, tpu.core_type = #tpu.core_type<tc>, window_params = [{transform_indices = @transform_0, window_bounds = array<i64: 1, 8, 33>}, {transform_indices = @transform_1, window_bounds = array<i64: 1, 8, 33, 16>}, {pipeline_mode = #tpu.pipeline_mode<synchronous>, transform_indices = @transform_2, window_bounds = array<i64: 1, 16>}, {transform_indices = @transform_3, window_bounds = array<i64: 1, 8, 8, 16>}]} {
    %c0 = arith.constant 0 : index
    %c0_0 = arith.constant 0 : index
    %c0_1 = arith.constant 0 : index
    %0 = vector.load %arg2[%c0, %c0_0, %c0_1] : memref<1x8x33xf32, #tpu.memory_space<vmem>>, vector<1x8x33xf32>
    %1 = vector.shape_cast %0 : vector<1x8x33xf32> to vector<8x33xf32>
    %c0_2 = arith.constant 0 : index
    %c0_3 = arith.constant 0 : index
    %c0_4 = arith.constant 0 : index
    %c0_5 = arith.constant 0 : index
    %2 = vector.load %arg3[%c0_2, %c0_3, %c0_4, %c0_5] : memref<1x8x33x16xf32, #tpu.memory_space<vmem>>, vector<1x8x33x16xf32>
    %3 = vector.shape_cast %2 : vector<1x8x33x16xf32> to vector<8x33x16xf32>
    %4 = vector.shape_cast %1 : vector<8x33xf32> to vector<1x8x33xf32>
    %5 = vector.shape_cast %4 : vector<1x8x33xf32> to vector<1x8x33xf32>
    %6 = vector.broadcast %5 : vector<1x8x33xf32> to vector<8x8x33xf32>
    "tpu.trace_start"() <{level = 10 : i32, message = "nme,neo->nmo"}> : () -> ()
    %cst = arith.constant dense<0.000000e+00> : vector<8x8x16xf32>
    %7 = tpu.matmul %6, %3, %cst {dimension_numbers = #tpu.dot_dimension_numbers<[2], [1], [1], [2], [0, 0, 0, 1, 1, 2], [0], [0]>} : vector<8x8x33xf32>, vector<8x33x16xf32>, vector<8x8x16xf32> -> vector<8x8x16xf32>
    "tpu.trace_stop"() : () -> ()
    %c0_6 = arith.constant 0 : index
    %c0_7 = arith.constant 0 : index
    %8 = vector.load %arg4[%c0_6, %c0_7] : memref<1x16xf32, #tpu.memory_space<vmem>>, vector<1x16xf32>
    %9 = vector.shape_cast %8 : vector<1x16xf32> to vector<1x1x16xf32>
    %10 = vector.broadcast %9 : vector<1x1x16xf32> to vector<8x8x16xf32>
    %11 = arith.addf %7, %10 : vector<8x8x16xf32>
    %c0_8 = arith.constant 0 : index
    %c0_9 = arith.constant 0 : index
    %c0_10 = arith.constant 0 : index
    %c0_11 = arith.constant 0 : index
    %12 = vector.load %arg5[%c0_8, %c0_9, %c0_10, %c0_11] : memref<1x8x8x16xf32, #tpu.memory_space<vmem>>, vector<1x8x8x16xf32>
    %13 = vector.shape_cast %12 : vector<1x8x8x16xf32> to vector<8x8x16xf32>
    %14 = vector.shape_cast %11 : vector<8x8x16xf32> to vector<1x8x8x16xf32>
    tpu.vector_store %arg5[%c0_8, %c0_9, %c0_10, %c0_11], %14 {strides = array<i32>} : memref<1x8x8x16xf32, #tpu.memory_space<vmem>>, vector<1x8x8x16xf32>,
    return
  }
  func.func @transform_0(%arg0: i32, %arg1: i32) -> (i32, i32, i32) {
    %c0_i32 = arith.constant 0 : i32
    %c0_i32_0 = arith.constant 0 : i32
    %c0_i32_1 = arith.constant 0 : i32
    return %arg0, %c0_i32, %c0_i32_0 : i32, i32, i32
  }
  func.func @transform_1(%arg0: i32, %arg1: i32) -> (i32, i32, i32, i32) {
    %c0_i32 = arith.constant 0 : i32
    %c0_i32_0 = arith.constant 0 : i32
    %c0_i32_1 = arith.constant 0 : i32
    return %arg0, %arg1, %c0_i32, %c0_i32_0 : i32, i32, i32, i32
  }
  func.func @transform_2(%arg0: i32, %arg1: i32) -> (i32, i32) {
    %c0_i32 = arith.constant 0 : i32
    %c0_i32_0 = arith.constant 0 : i32
    %c0_i32_1 = arith.constant 0 : i32
    return %c0_i32, %c0_i32_0 : i32, i32
  }
  func.func @transform_3(%arg0: i32, %arg1: i32) -> (i32, i32, i32, i32) {
    %c0_i32 = arith.constant 0 : i32
    %c0_i32_0 = arith.constant 0 : i32
    %c0_i32_1 = arith.constant 0 : i32
    return %arg0, %arg1, %c0_i32, %c0_i32_0 : i32, i32, i32, i32
  }
}

</mosaic_0001>

<bundles_post_ra>
// kernel: biaf_cross_forward.2
= control target key start
LH: loop header
LB: loop body
LE: loop exit
PB: predicated region body
PF: predicated region fallthrough
CT: control target
= control target key end

     0   :  { %v361_v3 = vmov 0.0   ;;  %vm45_vm0 = vcmask 1040384   ;;  %vm38_vm1 = vcmask 269312   ;;  %vm294_vm2 = vcmask 130048   ;;  %s500_s1 = inlined_call_operand.vmem [shape: f32[33,528], index: 1, kind: input, shape index: {}]   ;;  %s501_s0 = inlined_call_operand.vmem [shape: f32[16,33], index: 0, kind: input, shape index: {}]   ;;  %s502_s2 = inlined_call_operand.vmem [shape: f32[16,528], index: 2, kind: output, shape index: {}]  }
   0x1   :  { %v14_v0 = vld [vmem:[%s500_s1 + $0x8] sm:$0xff]  ;;  %v19_v1 = vld [vmem:[%s500_s1 + $0x30] sm:$0xff]  ;;  %v13_v2 = vld [vmem:[%s500_s1] sm:$0xff]  ;;  %125 = vmatprep.mubr.f32.mxu0 %v361_v3  ;;  %202 = vmatprep.mubr.f32.mxu1 %v361_v3 }
   0x2   :  { %v336_v4 = vpack.c.bf16 %v19_v1, %v14_v0  ;;  %v18_v5 = vld [vmem:[%s500_s1 + $0x28] sm:$0xff]  ;;  %v24_v6 = vld [vmem:[%s500_s1 + $0x58] sm:$0xff]  ;;  %v29_v7 = vld [vmem:[%s500_s1 + $0x80] sm:$0xff] }
   0x3   :  { %v338_v8 = vpack.c.bf16 %v18_v5, %v13_v2  ;;  %v340_v9 = vpack.c.bf16 %v29_v7, %v24_v6  ;;  %v23_v10 = vld [vmem:[%s500_s1 + $0x50] sm:$0xff]  ;;  %v28_v11 = vld [vmem:[%s500_s1 + $0x78] sm:$0xff]  ;;  %v21_v13 = vld [vmem:[%s500_s1 + $0x40] sm:$0xff] }
   0x4   :  { %v16_v12 = vld [vmem:[%s500_s1 + $0x18] sm:$0xff]  ;;  %337 = vmatprep.subr.bf16.mxu0 %v336_v4  ;;  %v15_v14 = vld [vmem:[%s500_s1 + $0x10] sm:$0xff]  ;;  %v342_v16 = vpack.c.bf16 %v28_v11, %v23_v10  ;;  %v34_v19 = vld [vmem:[%s500_s1 + $0xa8] sm:$0x1] }
   0x5   :  { %v20_v15 = vld [vmem:[%s500_s1 + $0x38] sm:$0xff]  ;;  %339 = vmatpush1.bf16.msra.mxu0 %v338_v8  ;;  %v344_v17 = vpack.c.bf16 %v21_v13, %v16_v12  ;;  %v26_v20 = vld [vmem:[%s500_s1 + $0x68] sm:$0xff]  ;;  %v31_v21 = vld [vmem:[%s500_s1 + $0x90] sm:$0xff] }
   0x6   :  { %v346_v18 = vpack.c.bf16 %v20_v15, %v15_v14  ;;  %341 = vmatprep.subr.bf16.mxu0 %v340_v9  ;;  %v17_v22 = vld [vmem:[%s500_s1 + $0x20] sm:$0xff]  ;;  %v348_v23 = vpack.c.bf16 %v31_v21, %v26_v20  ;;  %v22_v24 = vld [vmem:[%s500_s1 + $0x48] sm:$0xff]  ;;  %v27_v28 = vld [vmem:[%s500_s1 + $0x70] sm:$0xff] }
   0x7   :  { %345 = vmatprep.subr.bf16.mxu1 %v344_v17  ;;  %v25_v25 = vld [vmem:[%s500_s1 + $0x60] sm:$0xff]  ;;  %v30_v26 = vld [vmem:[%s500_s1 + $0x88] sm:$0xff]  ;;  %v32_v29 = vld [vmem:[%s500_s1 + $0x98] sm:$0xff]  ;;  %v352_v31 = vpack.c.bf16 %v22_v24, %v17_v22 }
   0x8   :  { %347 = vmatpush1.bf16.msra.mxu1 %v346_v18  ;;  %v350_v27 = vpack.c.bf16 %v30_v26, %v25_v25  ;;  %v33_v30 = vld [vmem:[%s500_s1 + $0xa0] sm:$0x1]  ;;  %v36_v32 = vld [vmem:[%s500_s1 + $0xb8] sm:$0x1]  ;;  %v356_v34 = vpack.c.bf16 %v32_v29, %v27_v28  ;;  %v35_v35 = vld [vmem:[%s500_s1 + $0xb0] sm:$0x1] }
   0x9   :  { %343 = vmatpush1.bf16.msra.mxu0 %v342_v16  ;;  %349 = vmatprep.subr.bf16.mxu1 %v348_v23  ;;  %v11_v33 = vld [vmem:[%s501_s0] sm:$0xff]  ;;  %v12_v36 = vld [vmem:[%s501_s0 + $0x8] sm:$0xff] }
   0xa   :  { %305 = vmatprep.subr.msk.mxu0 %vm45_vm0, %v34_v19  ;;  %v37_v37 = vld [vmem:[%s500_s1 + $0xc0] sm:$0x1] }
   0xc   :  { %351 = vmatpush1.bf16.msra.mxu1 %v350_v27 }
   0xd   :  { %306 = vmatpush1.msk.msra.mxu0 %vm45_vm0, %v33_v30  ;;  %309 = vmatprep.subr.msk.mxu1 %vm45_vm0, %v36_v32 }
   0xe   :  { %307 = vmatmul.mubr.msk.f32.vlgmr.msra.gmra.mrb[0].mxu0 %vm38_vm1, %v11_v33  ;;  %353 = vmatprep.subr.bf16.mxu0 %v352_v31 }
   0xf   :  { %355 = vmatpush3.bf16.msra.mxu0 %v352_v31  ;;  %131 = vmatprep.mubr.f32.mxu0 %v361_v3 }
  0x10   :  { %357 = vmatprep.subr.bf16.mxu0 %v356_v34  ;;  %310 = vmatpush1.msk.msra.mxu1 %vm45_vm0, %v35_v35 }
  0x11   :  { %311 = vmatmul.mubr.msk.f32.vlgmr.msra.gmra.mrb[0].mxu1 %vm38_vm1, %v11_v33 }
  0x12   :  { %308 = vmatmul.mubr.msk.f32.gmra.mrb[2].mxu0 %vm38_vm1, %v12_v36  ;;  %208 = vmatprep.mubr.f32.mxu1 %v361_v3 }
  0x13   :  { %359 = vmatpush3.bf16.msra.mxu0 %v356_v34  ;;  %333 = vmatprep.mubr.msk.f32.mxu0 %vm38_vm1, %v11_v33 }
  0x14   :  { %331 = vmatprep.subr.msk.mxu0 %vm45_vm0, %v37_v37 }
  0x15   :  { %312 = vmatmul.mubr.msk.f32.gmra.mrb[2].mxu1 %vm38_vm1, %v12_v36 }
  0x17   :  { %332 = vmatpush3.msk.msra.mxu0 %vm45_vm0, %v37_v37 }
  0x18   :  { %334 = vmatmul.mubr.msk.f32.vlgmr.msra.gmra.mrb[4].mxu0 %vm38_vm1, %v12_v36 }
  0xe1   :  { %v127_v38 = vpop.f32.mrb[0].mxu0 }
  0xe2   :  { %290 = vst [vmem:[%s502_s2] sm:$0xff] %v127_v38  ;;  %v129_v39 = vpop.f32.mrb[1].mxu0 }
  0xe3   :  { %291 = vst [vmem:[%s502_s2 + $0x8] sm:$0xff] %v129_v39 }
  0xe4   :  { %v204_v40 = vpop.f32.mrb[0].mxu1 }
  0xe5   :  { %v133_v41 = vpop.f32.mrb[2].mxu0  ;;  %292 = vst [vmem:[%s502_s2 + $0x10] sm:$0xff] %v204_v40  ;;  %v206_v42 = vpop.f32.mrb[1].mxu1 }
  0xe6   :  { %296 = vst [vmem:[%s502_s2 + $0x28] sm:$0xff] %v133_v41  ;;  %v135_v43 = vpop.f32.mrb[3].mxu0  ;;  %293 = vst [vmem:[%s502_s2 + $0x18] sm:$0xff] %v206_v42 }
  0xe7   :  { %297 = vst [vmem:[%s502_s2 + $0x30] sm:$0xff] %v135_v43 }
  0xe8   :  { %v210_v44 = vpop.f32.mrb[2].mxu1 }
  0xe9   :  { %298 = vst [vmem:[%s502_s2 + $0x38] sm:$0xff] %v210_v44  ;;  %v212_v45 = vpop.f32.mrb[3].mxu1 }
  0xea   :  { %299 = vst [vmem:[%s502_s2 + $0x40] sm:$0xff] %v212_v45 }
  0xeb   :  { %v335_v46 = vpop.f32.mrb[4].mxu0 }
  0xec   :  { %300 = vst.msk [vmem:[%s502_s2 + $0x48] sm:$0xff] %vm294_vm2, %v335_v46  ;;  %v281_v47 = vpop.f32.mrb[5].mxu0 }
  0xed   :  { %295 = vst.msk [vmem:[%s502_s2 + $0x20] sm:$0xff] %vm294_vm2, %v281_v47 }

// kernel: biaf_cross_forward.3
= control target key start
LH: loop header
LB: loop body
LE: loop exit
PB: predicated region body
PF: predicated region fallthrough
CT: control target
= control target key end

     0   :  { %8 = vsyncpa [#allocation3], 0  ;;  %s1615_s0 = inlined_call_operand.vmem [shape: f32[2,8,33], index: 0, kind: input, shape index: {}]   ;;  %s1616_s1 = inlined_call_operand.vmem [shape: f32[2,8,33,16], index: 1, kind: input, shape index: {}]   ;;  %s1617_s2 = inlined_call_operand.vmem [shape: f32[1,16], index: 2, kind: input, shape index: {}]   ;;  %s1618_s3 = inlined_call_operand.hbm [shape: f32[2,8,8,16], index: 3, kind: output, shape index: {}]  }
   0x1   :  { %10 = vsyncpa [#allocation3 + $0x1], 0  ;;  %s1374_s12 = smov 0   ;;  %s1376_s13 = smov 0  }
   0x2   :  { %s1378_s14 = smov 0   ;;  %s1380_s15 = smov 0  }
   0x3   :  { %s1382_s16 = smov 0   ;;  %s1384_s17 = smov 0  }
   0x4 LB: > { %s976_s18 = sadd.s32 4294967295, %s1346_s17   ;;  %s977_s19 = sadd.s32 4294967294, %s1346_s17   ;;  %s1346_s17 = sphi %s1384_s17, %s16_s17   ;;  %s1342_s16 = sphi %s1382_s16, %s1625_s16   ;;  %s1338_s15 = sphi %s1380_s15, %s1624_s15   ;;  %s1334_s14 = sphi %s1378_s14, %s1623_s14   ;;  %s1330_s13 = sphi %s1376_s13, %s1622_s13   ;;  %s1326_s12 = sphi %s1374_s12, %s1621_s12  }
   0x5   : > { %s28_s20 = sadd.s32 1, %s1342_s16  ;;  %s112_s21 = sadd.s32 1, %s1334_s14 }
   0x6   : > { %p30_p0 = scmp.ge.s32.totalorder %s28_s20, 2  ;;  %p122_p1 = scmp.ne.s32.totalorder %s1334_s14, %s1330_s13 }
   0x7   : > { %p123_p2 = scmp.eq.s32.totalorder %s976_s18, 1  ;;  %p128_p3 = scmp.ne.s32.totalorder %s1330_s13, %s1326_s12 }
   0x8   : > { %s1627_s20 = smov (%p30_p0, %s28_s20), 0  ;;  %p129_p5 = scmp.eq.s32.totalorder %s977_s19, 1 }
   0x9   : > { %p1414_p4 = por %p123_p2, %p122_p1  ;;  %s107_s23 = ssub.s32 %s1342_s16, %s1627_s20 }
   0xa   : > { %p980_p6 = scmp.ge.s32.totalorder %s1346_s17, 1  ;;  %p110_p7 = scmp.eq.s32.totalorder %s107_s23, 0 }
   0xb   : > { %p1421_p8 = por %p129_p5, %p128_p3  ;;  %p171_p9 = scmp.lt.s32.totalorder %s1346_s17, 3 }
   0xc   : > { %s1427_s25 = scalar_select %p110_p7, %s1334_s14, %s112_s21  }
   0xd   : > { %p172_p10 = pnand %p980_p6, %p171_p9 }
   0xe   : > { %p204_p11 = scmp.lt.s32.totalorder (!%p172_p10), %s1338_s15, 1  ;;  %v1348_v0 = vmov (!%p172_p10), 0.0|0.0   ;;  %vm1349_vm0 = vmmov (!%p172_p10), 0   ;;  %v1350_v1 = vmov (!%p172_p10), 0.0   ;;  %vm272_vm1 = vcmask (!%p172_p10), 1040384   ;;  %s201_s8 = sand.u32 (!%p172_p10), 1, %s1330_s13  }
   0xf   : > { %175 = sbr.rel (%p172_p10) target bundleno = 302 (0x12e), region = 32  ;;  %1159 = vmatprep.subr.bf16.mxu0 (!%p172_p10), %v1348_v0  ;;  %1165 = vmatprep.subr.bf16.mxu1 (!%p172_p10), %v1348_v0  ;;  %vm268_vm2 = vcmask (!%p172_p10), 269312   ;;  %s981_s9 = sshll.u32 (!%p172_p10), %s201_s8, 6  ;;  %v984_v59 = vld [vmem:[%s1617_s2] ss:$0 sm:$0xff] (!%p172_p10)  ;;  %vm857_vm3 = vcmask (!%p172_p10), 130048  }
  0x10   : > { %1065 = vmatprep.mubr.msk.f32.mxu0 (!%p172_p10), %vm1349_vm0, %v1350_v1  ;;  %1078 = vmatprep.mubr.msk.f32.mxu1 (!%p172_p10), %vm1349_vm0, %v1350_v1  ;;  %s203_s18 = scalar_lea.vmem (!%p172_p10), [#allocation2], %s981_s9  ;;  %s1006_s19 = sshll.u32 (!%p172_p10), %s1338_s15, 10 }
  0x11   : > { %s882_s21 = sshll.u32 (!%p172_p10), %s203_s18, 4  ;;  %s1351_s29 = smov (!%p172_p10), [#allocation2]   ;;  %s1563_s21 = int_to_ptr.vmem [resolvable:$true] %s882_s21 }
  0x12   : > { %s1268_s28 = scalar_lea.vmem (!%p172_p10), %s1563_s21, 1024 }
  0x13   : > { %p1269_p12 = scmp.ne.s32.totalorder (!%p172_p10), %s1563_s21, %s1268_s28 }
  0x15   : > { %p1270_p13 = pnand (!%p172_p10), %p1269_p12, %p1414_p4 }
  0x16   : > { %s205_s26 = scalar_select %p204_p11, %s1338_s15, 1 }
  0x17   : > { %s1569_s15 = scalar_lea.sflag [#allocation3], %s201_s8  ;;  %p1271_p0 = pneg %p1270_p13 }
  0x18   : > { %s1207_s27 = smul.u32 320, %s205_s26  ;;  %s982_s4 = sshll.u32 %s205_s26, 3 }
  0x19   : > { %s207_s7 = scalar_lea.vmem %s1615_s0, %s982_s4 }
  0x1a   : > { %s1440_s30 = scalar_lea.vmem %s1616_s1, %s1207_s27  ;;  %v1463_v20 = vld [vmem:[%s207_s7] sm:$0xff]  ;;  %s1561_s27 = scalar_lea.hbm %s1618_s3, %s1006_s19 }
  0x1b   : > { %v221_v2 = vld [vmem:[%s1440_s30] sm:$0xff]  ;;  %v222_v3 = vld [vmem:[%s1440_s30 + $0x8] sm:$0xff]  ;;  %v227_v6 = vld [vmem:[%s1440_s30 + $0x30] sm:$0xff] }
  0x1c   : > { %v226_v4 = vld [vmem:[%s1440_s30 + $0x28] sm:$0xff]  ;;  %v1160_v5 = vpack.c.bf16 %v222_v3, %v221_v2  ;;  %v223_v7 = vld [vmem:[%s1440_s30 + $0x10] sm:$0xff]  ;;  %v224_v8 = vld [vmem:[%s1440_s30 + $0x18] sm:$0xff] }
  0x1d   : > { %v1166_v9 = vpack.c.bf16 %v227_v6, %v226_v4  ;;  %v228_v10 = vld [vmem:[%s1440_s30 + $0x38] sm:$0xff]  ;;  %v229_v11 = vld [vmem:[%s1440_s30 + $0x40] sm:$0xff]  ;;  %v1163_v12 = vpack.c.bf16 %v224_v8, %v223_v7  ;;  %v231_v14 = vld [vmem:[%s1440_s30 + $0x50] sm:$0xff] }
  0x1e   : > { %1161 = vmatpush3.bf16.msra.mxu0 %v1160_v5  ;;  %v1169_v13 = vpack.c.bf16 %v229_v11, %v228_v10  ;;  %v232_v15 = vld [vmem:[%s1440_s30 + $0x58] sm:$0xff]  ;;  %v225_v16 = vld [vmem:[%s1440_s30 + $0x20] sm:$0x1]  ;;  %v230_v19 = vld [vmem:[%s1440_s30 + $0x48] sm:$0x1] }
  0x1f   : > { %1167 = vmatpush3.bf16.msra.mxu1 %v1166_v9  ;;  %1162 = vmatprep.subr.bf16.mxu0 %v1348_v0  ;;  %v236_v17 = vld [vmem:[%s1440_s30 + $0x78] sm:$0xff]  ;;  %v237_v18 = vld [vmem:[%s1440_s30 + $0x80] sm:$0xff]  ;;  %v1172_v21 = vpack.c.bf16 %v232_v15, %v231_v14  ;;  %v234_v24 = vld [vmem:[%s1440_s30 + $0x68] sm:$0xff] }
  0x20   : > { %1168 = vmatprep.subr.bf16.mxu1 %v1348_v0  ;;  %v1178_v22 = vpack.c.bf16 %v237_v18, %v236_v17  ;;  %v233_v23 = vld [vmem:[%s1440_s30 + $0x60] sm:$0xff]  ;;  %v238_v25 = vld [vmem:[%s1440_s30 + $0x88] sm:$0xff]  ;;  %v239_v26 = vld [vmem:[%s1440_s30 + $0x90] sm:$0xff] }
  0x21   : > { %v1175_v27 = vpack.c.bf16 %v234_v24, %v233_v23  ;;  %v1181_v28 = vpack.c.bf16 %v239_v26, %v238_v25  ;;  %v241_v29 = vld [vmem:[%s1440_s30 + $0xa0] sm:$0xff]  ;;  %v242_v30 = vld [vmem:[%s1440_s30 + $0xa8] sm:$0xff]  ;;  %v235_v31 = vld [vmem:[%s1440_s30 + $0x70] sm:$0x1] }
  0x22   : > { %1164 = vmatpush3.bf16.msra.mxu0 %v1163_v12  ;;  %v246_v32 = vld [vmem:[%s1440_s30 + $0xc8] sm:$0xff]  ;;  %v247_v33 = vld [vmem:[%s1440_s30 + $0xd0] sm:$0xff]  ;;  %v240_v34 = vld [vmem:[%s1440_s30 + $0x98] sm:$0x1]  ;;  %v1184_v35 = vpack.c.bf16 %v242_v30, %v241_v29 }
  0x23   : > { %1170 = vmatpush3.bf16.msra.mxu1 %v1169_v13  ;;  %1063 = vmatprep.subr.mxu0 %v1350_v1  ;;  %v1190_v36 = vpack.c.bf16 %v247_v33, %v246_v32  ;;  %v243_v37 = vld [vmem:[%s1440_s30 + $0xb0] sm:$0xff]  ;;  %v244_v38 = vld [vmem:[%s1440_s30 + $0xb8] sm:$0xff]  ;;  %v249_v40 = vld [vmem:[%s1440_s30 + $0xe0] sm:$0xff] }
  0x24   : > { %1076 = vmatprep.subr.mxu1 %v1350_v1  ;;  %v248_v39 = vld [vmem:[%s1440_s30 + $0xd8] sm:$0xff]  ;;  %v1187_v41 = vpack.c.bf16 %v244_v38, %v243_v37  ;;  %v251_v43 = vld [vmem:[%s1440_s30 + $0xf0] sm:$0xff]  ;;  %v245_v45 = vld [vmem:[%s1440_s30 + $0xc0] sm:$0x1] }
  0x25   : > { %v1193_v42 = vpack.c.bf16 %v249_v40, %v248_v39  ;;  %v252_v44 = vld [vmem:[%s1440_s30 + $0xf8] sm:$0xff]  ;;  %v257_v47 = vld [vmem:[%s1440_s30 + $0x120] sm:$0xff]  ;;  %v250_v48 = vld [vmem:[%s1440_s30 + $0xe8] sm:$0x1] }
  0x26   : > { %1064 = vmatpush3.msk.msra.mxu0 %vm272_vm1, %v225_v16  ;;  %v256_v46 = vld [vmem:[%s1440_s30 + $0x118] sm:$0xff]  ;;  %v1196_v49 = vpack.c.bf16 %v252_v44, %v251_v43  ;;  %v253_v51 = vld [vmem:[%s1440_s30 + $0x100] sm:$0xff]  ;;  %v254_v52 = vld [vmem:[%s1440_s30 + $0x108] sm:$0xff] }
  0x27   : > { %1077 = vmatpush3.msk.msra.mxu1 %vm272_vm1, %v230_v19  ;;  %1066 = vmatmul.mubr.msk.f32.vlgmr.msra.gmra.mrb[0].mxu0 %vm268_vm2, %v1463_v20  ;;  %v1202_v50 = vpack.c.bf16 %v257_v47, %v256_v46  ;;  %v258_v53 = vld [vmem:[%s1440_s30 + $0x128] sm:$0xff]  ;;  %v259_v54 = vld [vmem:[%s1440_s30 + $0x130] sm:$0xff]  ;;  %v1199_v55 = vpack.c.bf16 %v254_v52, %v253_v51  ;;  %v260_v58 = vld [vmem:[%s1440_s30 + $0x138] sm:$0x1] }
  0x28   : > { %1079 = vmatmul.mubr.msk.f32.vlgmr.msra.gmra.mrb[0].mxu1 %vm268_vm2, %v1463_v20  ;;  %1171 = vmatprep.subr.bf16.mxu0 %v1348_v0  ;;  %v1205_v56 = vpack.c.bf16 %v259_v54, %v258_v53  ;;  %v255_v57 = vld [vmem:[%s1440_s30 + $0x110] sm:$0x1]  ;;  %s1272_s30 = sshll.u32 %s1351_s29, 4  ;;  %s1273_s30 = int_to_ptr.vmem [resolvable:$false] %s1272_s30 }
  0x29   : > { %1177 = vmatprep.subr.bf16.mxu1 %v1348_v0  ;;  %1173 = vmatpush3.bf16.msra.mxu0 %v1172_v21  ;;  %s1274_s4 = scalar_lea.vmem %s1273_s30, 2048  ;;  %p1275_p1 = scmp.lt.s32.totalorder %s1563_s21, %s1273_s30 }
  0x2a   : > { %1179 = vmatpush3.bf16.msra.mxu1 %v1178_v22  ;;  %1174 = vmatprep.subr.bf16.mxu0 %v1348_v0  ;;  %p1276_p2 = scmp.lt.s32.totalorder %s1274_s4, %s1268_s28 }
  0x2b   : > { %1180 = vmatprep.subr.bf16.mxu1 %v1348_v0  ;;  %1091 = vmatprep.mubr.msk.f32.mxu0 %vm1349_vm0, %v1350_v1 }
  0x2c   : > { %1104 = vmatprep.mubr.msk.f32.mxu1 %vm1349_vm0, %v1350_v1  ;;  %p1277_p3 = por %p1276_p2, %p1275_p1 }
  0x2d   : > { %1176 = vmatpush3.bf16.msra.mxu0 %v1175_v27 }
  0x2e   : > { %1182 = vmatpush3.bf16.msra.mxu1 %v1181_v28  ;;  %1089 = vmatprep.subr.mxu0 %v1350_v1  ;;  %p1278_p5 = pnand %p1277_p3, %p1271_p0 }
  0x2f   : > { %1102 = vmatprep.subr.mxu1 %v1350_v1 }
  0x31   : > { %1090 = vmatpush3.msk.msra.mxu0 %vm272_vm1, %v235_v31 }
  0x32   : > { %1103 = vmatpush3.msk.msra.mxu1 %vm272_vm1, %v240_v34  ;;  %1092 = vmatmul.mubr.msk.f32.vlgmr.msra.gmra.mrb[2].mxu0 %vm268_vm2, %v1463_v20 }
  0x33   : > { %1105 = vmatmul.mubr.msk.f32.vlgmr.msra.gmra.mrb[2].mxu1 %vm268_vm2, %v1463_v20  ;;  %1183 = vmatprep.subr.bf16.mxu0 %v1348_v0 }
  0x34   : > { %1189 = vmatprep.subr.bf16.mxu1 %v1348_v0  ;;  %1185 = vmatpush3.bf16.msra.mxu0 %v1184_v35 }
  0x35   : > { %1191 = vmatpush3.bf16.msra.mxu1 %v1190_v36  ;;  %1186 = vmatprep.subr.bf16.mxu0 %v1348_v0 }
  0x36   : > { %1192 = vmatprep.subr.bf16.mxu1 %v1348_v0  ;;  %1117 = vmatprep.mubr.msk.f32.mxu0 %vm1349_vm0, %v1350_v1 }
  0x37   : > { %1130 = vmatprep.mubr.msk.f32.mxu1 %vm1349_vm0, %v1350_v1 }
  0x38   : > { %1188 = vmatpush3.bf16.msra.mxu0 %v1187_v41 }
  0x39   : > { %1194 = vmatpush3.bf16.msra.mxu1 %v1193_v42  ;;  %1115 = vmatprep.subr.mxu0 %v1350_v1 }
  0x3a   : > { %1128 = vmatprep.subr.mxu1 %v1350_v1 }
  0x3c   : > { %1116 = vmatpush3.msk.msra.mxu0 %vm272_vm1, %v245_v45 }
  0x3d   : > { %1129 = vmatpush3.msk.msra.mxu1 %vm272_vm1, %v250_v48  ;;  %1118 = vmatmul.mubr.msk.f32.vlgmr.msra.gmra.mrb[4].mxu0 %vm268_vm2, %v1463_v20 }
  0x3e   : > { %1131 = vmatmul.mubr.msk.f32.vlgmr.msra.gmra.mrb[4].mxu1 %vm268_vm2, %v1463_v20  ;;  %1195 = vmatprep.subr.bf16.mxu0 %v1348_v0 }
  0x3f   : > { %1201 = vmatprep.subr.bf16.mxu1 %v1348_v0  ;;  %1197 = vmatpush3.bf16.msra.mxu0 %v1196_v49 }
  0x40   : > { %1203 = vmatpush3.bf16.msra.mxu1 %v1202_v50  ;;  %1198 = vmatprep.subr.bf16.mxu0 %v1348_v0 }
  0x41   : > { %1204 = vmatprep.subr.bf16.mxu1 %v1348_v0  ;;  %1143 = vmatprep.mubr.msk.f32.mxu0 %vm1349_vm0, %v1350_v1 }
  0x42   : > { %1156 = vmatprep.mubr.msk.f32.mxu1 %vm1349_vm0, %v1350_v1 }
  0x43   : > { %1200 = vmatpush3.bf16.msra.mxu0 %v1199_v55 }
  0x44   : > { %1206 = vmatpush3.bf16.msra.mxu1 %v1205_v56  ;;  %1141 = vmatprep.subr.mxu0 %v1350_v1 }
  0x45   : > { %1154 = vmatprep.subr.mxu1 %v1350_v1 }
  0x47   : > { %1142 = vmatpush3.msk.msra.mxu0 %vm272_vm1, %v255_v57 }
  0x48   : > { %1155 = vmatpush3.msk.msra.mxu1 %vm272_vm1, %v260_v58  ;;  %1144 = vmatmul.mubr.msk.f32.vlgmr.msra.gmra.mrb[6].mxu0 %vm268_vm2, %v1463_v20 }
  0x49   : > { %1157 = vmatmul.mubr.msk.f32.vlgmr.msra.gmra.mrb[6].mxu1 %vm268_vm2, %v1463_v20 }
  0xfa   : > { %v342_v60 = vpop.f32.mrb[0].mxu0 }
  0xfb   : > { %v343_v61 = vadd.f32 %v984_v59, %v342_v60  ;;  %v415_v62 = vpop.f32.mrb[0].mxu1  ;;  %v1067_v63 = vpop.f32.mrb[1].mxu0 }
  0xfc   : > { %v416_v0 = vadd.f32 %v984_v59, %v415_v62  ;;  %v1080_v1 = vpop.f32.mrb[1].mxu1 }
  0xfd   : > { %858 = vst.msk [vmem:[%s203_s18] sm:$0xff] %vm857_vm3, %v343_v61 }
  0xfe   : > { %859 = vst.msk [vmem:[%s203_s18 + $0x8] sm:$0xff] %vm857_vm3, %v416_v0 }
 0x105   : > { %v488_v2 = vpop.f32.mrb[2].mxu0 }
 0x106   : > { %v489_v3 = vadd.f32 %v984_v59, %v488_v2  ;;  %v561_v4 = vpop.f32.mrb[2].mxu1  ;;  %v1093_v5 = vpop.f32.mrb[3].mxu0 }
 0x107   : > { %v562_v6 = vadd.f32 %v984_v59, %v561_v4  ;;  %v1106_v7 = vpop.f32.mrb[3].mxu1 }
 0x108   : > { %860 = vst.msk [vmem:[%s203_s18 + $0x10] sm:$0xff] %vm857_vm3, %v489_v3 }
 0x109   : > { %861 = vst.msk [vmem:[%s203_s18 + $0x18] sm:$0xff] %vm857_vm3, %v562_v6 }
 0x110   : > { %v634_v8 = vpop.f32.mrb[4].mxu0 }
 0x111   : > { %v635_v9 = vadd.f32 %v984_v59, %v634_v8  ;;  %v707_v10 = vpop.f32.mrb[4].mxu1  ;;  %v1119_v11 = vpop.f32.mrb[5].mxu0 }
 0x112   : > { %v708_v12 = vadd.f32 %v984_v59, %v707_v10  ;;  %v1132_v13 = vpop.f32.mrb[5].mxu1 }
 0x113   : > { %862 = vst.msk [vmem:[%s203_s18 + $0x20] sm:$0xff] %vm857_vm3, %v635_v9 }
 0x114   : > { %863 = vst.msk [vmem:[%s203_s18 + $0x28] sm:$0xff] %vm857_vm3, %v708_v12 }
 0x11b   : > { %v780_v14 = vpop.f32.mrb[6].mxu0 }
 0x11c   : > { %v781_v15 = vadd.f32 %v984_v59, %v780_v14  ;;  %v853_v16 = vpop.f32.mrb[6].mxu1  ;;  %v1145_v17 = vpop.f32.mrb[7].mxu0 }
 0x11d   : > { %v854_v18 = vadd.f32 %v984_v59, %v853_v16  ;;  %v1158_v19 = vpop.f32.mrb[7].mxu1 }
 0x11e   : > { %864 = vst.msk [vmem:[%s203_s18 + $0x30] sm:$0xff] %vm857_vm3, %v781_v15 }
 0x11f   : > { %865 = vst.msk [vmem:[%s203_s18 + $0x38] sm:$0xff] %vm857_vm3, %v854_v18 }
 0x120   : > { %1281 = shalt.err (!%p1278_p5)
}
 0x121   : > { %s1282_s5 = scalar_lea.hbm %s1561_s27, 1024  ;;  %s1286_s8 = scalar_lea.hbm %s1618_s3, 2048 }
 0x122   : > { %p1283_p6 = scmp.ne.s32.totalorder %s1561_s27, %s1282_s5  ;;  %p1287_p10 = scmp.lt.u32.totalorder %s1561_s27, %s1618_s3 }
 0x123   : > { %p1288_p11 = scmp.lt.u32.totalorder %s1286_s8, %s1282_s5  ;;  %p1290_p13 = scmp.lt.u32.totalorder %s1282_s5, %s1561_s27 }
 0x124   : > { %p1284_p7 = pnand %p1283_p6, %p1414_p4 }
 0x125   : > { %p1289_p12 = por %p1288_p11, %p1287_p10 }
 0x126   : > { %p1285_p9 = pneg %p1284_p7 }
 0x127   : > { %p1291_p0 = por %p1290_p13, %p1289_p12 }
 0x129   : > { %p1292_p1 = pnand %p1291_p0, %p1285_p9 }
 0x12b   : > { %1295 = shalt.err (!%p1292_p1)
}
 0x12c   : > { %s1352_s11 = smov 128   ;;  %s1353_s18 = smov 8  }
 0x12d   : > { %1208 = dma.vmem_to_hbm [thread:$0]  (%p1414_p4), %s1563_s21, 1024, %s1561_s27, %s1569_s15, %s1352_s11, %s1352_s11, %s1353_s18  }
 0x12e PF: > { %p1214_p2 = scmp.ge.s32.totalorder %s1346_s17, 2  ;;  %s897_s19 = sand.u32 1, %s1326_s12  }
 0x12f   : > { %s898_s23 = scalar_lea.sflag [#allocation3], %s897_s19 }
 0x130   : > { %p1211_p3 = pnand %p1214_p2, %p1421_p8 }
 0x132   : > { %1321 = dma.done.wait (!%p1211_p3), %s898_s23, 1024  }
 0x133   : > { %1323 = vsyncadd (!%p1211_p3), %s898_s23, 4294966272  ;;  %s16_s17 = sadd.s32 1, %s1346_s17   ;;  %s1621_s12 = smov %s1330_s13 }
 0x134   : > { %p13_p5 = scmp.ge.s32.totalorder %s16_s17, 4   ;;  %s1622_s13 = smov %s1334_s14 }
 0x135   : > { %s1623_s14 = smov %s1427_s25  ;;  %s1624_s15 = smov %s1342_s16 }
 0x136   : > { %s1625_s16 = smov %s1627_s20  ;;  %15 = sbr.rel (!%p13_p5) target bundleno = 4 (0x4), region = 70 }
 0x13d   :  { %903 = vsyncpa [#allocation3], 1 }
 0x13e   :  { %905 = vsyncpa [#allocation3 + $0x1], 1 }

</bundles_post_ra>
